<compile_context>
chip_gen: v7x
topology: tpu7x:2x2x1
jax: 0.10.0
libtpu: 0.0.40
codegen_flags: <defaults>
</compile_context>

<pallas_src>
import numpy as np
import jax
import jax.numpy as jnp
from jax.experimental import pallas as pl
from jax.experimental.pallas import tpu as pltpu


_MAX_ROW_TILE = 512            # sublane-axis tile (multiple of 8)
_MAX_LANE_TILE = 1024          # lane-axis tile (multiple of 128)
_VMEM_LIMIT = 48 * 1024 * 1024


def _glu_kernel_split(a_ref, g_ref, o_ref):
    """a_ref/g_ref/o_ref are (TR, TC) VMEM tiles.  out = a * sigmoid(g)."""
    a = a_ref[...].astype(jnp.float32)
    g = g_ref[...].astype(jnp.float32)
    o_ref[...] = (a * jax.nn.sigmoid(g)).astype(o_ref.dtype)


def _glu_kernel_fused(x_ref, o_ref):
    """Fallback: x_ref (TR, 2*HP), o_ref (TR, HP); split inside the kernel."""
    hp = o_ref.shape[-1]
    a = x_ref[:, :hp].astype(jnp.float32)
    g = x_ref[:, hp:].astype(jnp.float32)
    o_ref[...] = (a * jax.nn.sigmoid(g)).astype(o_ref.dtype)


def glu(x: jax.Array, dim: int = -1) -> jax.Array:
    """Pallas TPU implementation of torch.nn.GLU: outputs * sigmoid(gate)."""
    dim = dim % x.ndim
    c = x.shape[dim]
    assert c % 2 == 0, "GLU split axis must be even"
    h = c // 2

    pre = int(np.prod(x.shape[:dim], dtype=np.int64)) if dim > 0 else 1
    post = int(np.prod(x.shape[dim + 1:], dtype=np.int64)) if dim + 1 < x.ndim else 1
    hp = h * post                       # lane extent of each half
    out_shape = x.shape[:dim] + (h,) + x.shape[dim + 1:]

    # Pure view, no transpose: columns [0, hp) = outputs, [hp, 2*hp) = gate.
    x2 = x.reshape(pre, 2 * hp)

    # Row (sublane) tile: full extent when small (always legal), otherwise a
    # multiple of 8 with a masked edge block via pl.cdiv.
    tr = pre if pre <= _MAX_ROW_TILE else _MAX_ROW_TILE
    grid_r = pl.cdiv(pre, tr)

    if hp % 128 == 0:
        # Fast path: lane-dense tiles, halves selected via index_map offsets.
        tc = min(hp, _MAX_LANE_TILE)
        while hp % tc:                  # multiple-of-128 divisor of hp
            tc -= 128
        grid_c = hp // tc
        n_a_blocks = hp // tc           # lane-block offset of the gate half

        out2 = pl.pallas_call(
            _glu_kernel_split,
            out_shape=jax.ShapeDtypeStruct((pre, hp), x.dtype),
            grid=(grid_r, grid_c),
            in_specs=[
                pl.BlockSpec((tr, tc), lambda i, j: (i, j)),
                pl.BlockSpec((tr, tc),
                             lambda i, j, _off=n_a_blocks: (i, j + _off)),
            ],
            out_specs=pl.BlockSpec((tr, tc), lambda i, j: (i, j)),
            compiler_params=pltpu.CompilerParams(
                dimension_semantics=("parallel", "parallel"),
                vmem_limit_bytes=_VMEM_LIMIT),
        )(x2, x2)
    else:
        # Fallback for halves that are not 128-lane aligned: full-width row
        # tiles (legal because block == full lane extent), split in-kernel.
        # TODO(synk): pad the lane axis to 128 if such shapes ever appear
        # with very large hp (full-width tiles could pressure VMEM).
        out2 = pl.pallas_call(
            _glu_kernel_fused,
            out_shape=jax.ShapeDtypeStruct((pre, hp), x.dtype),
            grid=(grid_r,),
            in_specs=[pl.BlockSpec((tr, 2 * hp), lambda i: (i, 0))],
            out_specs=pl.BlockSpec((tr, hp), lambda i: (i, 0)),
            compiler_params=pltpu.CompilerParams(
                dimension_semantics=("parallel",),
                vmem_limit_bytes=_VMEM_LIMIT),
        )(x2)

    return out2.reshape(out_shape)


def _glu_ref(x, dim):
    a, g = jnp.split(x, 2, axis=dim)
    return a * jax.nn.sigmoid(g)


if __name__ == "__main__":
    # Primary case: NCHW conv-GLU over channels (dim=1).
    # pre=2, H=2, post=256 -> lane-dense fast path (half width 512).
    x = jax.random.normal(jax.random.PRNGKey(0), (2, 4, 16, 16),
                          dtype=jnp.float32)
    out = jax.block_until_ready(glu(x, dim=1))
    assert out.shape == (2, 2, 16, 16), out.shape
    np.testing.assert_allclose(np.asarray(out), np.asarray(_glu_ref(x, 1)),
                               rtol=1e-6, atol=1e-6)

    # Last-dim case (fast path, half width 128).
    y = jax.random.normal(jax.random.PRNGKey(0), (2, 8, 256),
                          dtype=jnp.float32)
    out_y = jax.block_until_ready(glu(y, dim=-1))
    assert out_y.shape == (2, 8, 128), out_y.shape
    np.testing.assert_allclose(np.asarray(out_y), np.asarray(_glu_ref(y, -1)),
                               rtol=1e-6, atol=1e-6)

    # Small unaligned case (fallback path).
    z = jax.random.normal(jax.random.PRNGKey(0), (2, 6, 8), dtype=jnp.float32)
    out_z = jax.block_until_ready(glu(z, dim=1))
    assert out_z.shape == (2, 3, 8), out_z.shape
    np.testing.assert_allclose(np.asarray(out_z), np.asarray(_glu_ref(z, 1)),
                               rtol=1e-6, atol=1e-6)

    print("KERNEL_OK")
</pallas_src>

<mosaic_0001>
module attributes {stable_mosaic.version = 11 : i64} {
  func.func @_glu_kernel_split(%arg0: i32, %arg1: i32, %arg2: memref<2x512xf32, #tpu.memory_space<vmem>>, %arg3: memref<2x512xf32, #tpu.memory_space<vmem>>, %arg4: memref<2x512xf32, #tpu.memory_space<vmem>>) attributes {dimension_semantics = [#tpu.dimension_semantics<parallel>, #tpu.dimension_semantics<parallel>], iteration_bounds = array<i64: 1, 1>, scalar_prefetch = 0 : i64, scratch_operands = 0 : i64, tpu.core_type = #tpu.core_type<tc>, window_params = [{transform_indices = @transform_0, window_bounds = array<i64: 2, 512>}, {transform_indices = @transform_1, window_bounds = array<i64: 2, 512>}, {transform_indices = @transform_2, window_bounds = array<i64: 2, 512>}]} {
    %c0 = arith.constant 0 : index
    %c0_0 = arith.constant 0 : index
    %0 = vector.load %arg2[%c0, %c0_0] : memref<2x512xf32, #tpu.memory_space<vmem>>, vector<2x512xf32>
    %c0_1 = arith.constant 0 : index
    %c0_2 = arith.constant 0 : index
    %1 = vector.load %arg3[%c0_1, %c0_2] : memref<2x512xf32, #tpu.memory_space<vmem>>, vector<2x512xf32>
    %2 = arith.negf %1 : vector<2x512xf32>
    %3 = math.exp %2 : vector<2x512xf32>
    %cst = arith.constant 1.000000e+00 : f32
    %4 = vector.broadcast %cst : f32 to vector<2x512xf32>
    %5 = arith.addf %4, %3 : vector<2x512xf32>
    %6 = arith.divf %4, %5 : vector<2x512xf32>
    %7 = arith.mulf %0, %6 : vector<2x512xf32>
    %c0_3 = arith.constant 0 : index
    %c0_4 = arith.constant 0 : index
    %8 = vector.load %arg4[%c0_3, %c0_4] : memref<2x512xf32, #tpu.memory_space<vmem>>, vector<2x512xf32>
    tpu.vector_store %arg4[%c0_3, %c0_4], %7 {strides = array<i32>} : memref<2x512xf32, #tpu.memory_space<vmem>>, vector<2x512xf32>,
    return
  }
  func.func @transform_0(%arg0: i32, %arg1: i32) -> (i32, i32) {
    %c0_i32 = arith.constant 0 : i32
    return %arg0, %arg1 : i32, i32
  }
  func.func @transform_1(%arg0: i32, %arg1: i32) -> (i32, i32) {
    %c1_i32 = arith.constant 1 : i32
    %0 = arith.addi %arg1, %c1_i32 : i32
    %c0_i32 = arith.constant 0 : i32
    return %arg0, %0 : i32, i32
  }
  func.func @transform_2(%arg0: i32, %arg1: i32) -> (i32, i32) {
    %c0_i32 = arith.constant 0 : i32
    return %arg0, %arg1 : i32, i32
  }
}

</mosaic_0001>

<bundles_post_ra>
// kernel: tpu_custom_call.1
= control target key start
LH: loop header
LB: loop body
LE: loop exit
PB: predicated region body
PF: predicated region fallthrough
CT: control target
= control target key end

     0   :  { %7 = vsyncpa [#allocation3], 0  ;;  %s212_s0 = inlined_call_operand.hbm [shape: f32[2,1024], index: 0, kind: input, shape index: {}]   ;;  %s213_s1 = inlined_call_operand.hbm [shape: f32[2,1024], index: 1, kind: input, shape index: {}]   ;;  %s214_s2 = inlined_call_operand.hbm [shape: f32[2,512], index: 2, kind: output, shape index: {}]  }
   0x1   :  { %8 = vsyncpa [#allocation6], 0 }
   0x2   :  { %9 = vsyncpa [#allocation4], 0  ;;  %s173_s11 = scalar_lea.hbm %s213_s1, 128  ;;  %s152_s12 = smov [#allocation2]  }
   0x3   :  { %s16_s13 = sshll.u32 %s152_s12, 4  ;;  %s153_s14 = smov [#allocation5]   ;;  %s17_s13 = int_to_ptr.vmem [resolvable:$true] %s16_s13 }
   0x4   :  { %s30_s15 = sshll.u32 %s153_s14, 4  ;;  %s77_s18 = scalar_lea.hbm %s212_s0, 128  ;;  %s31_s15 = int_to_ptr.vmem [resolvable:$true] %s30_s15 }
   0x5   :  { %p78_p0 = scmp.ne.s32.totalorder %s212_s0, %s77_s18  ;;  %s79_s23 = scalar_lea.hbm %s212_s0, 256 }
   0x6   :  { %p80_p1 = scmp.lt.u32.totalorder %s79_s23, %s77_s18  ;;  %p81_p2 = scmp.lt.u32.totalorder %s77_s18, %s212_s0 }
   0x8   :  { %p82_p3 = por %p81_p2, %p80_p1 }
   0xa   :  { %p83_p4 = pnand %p82_p3, %p78_p0 }
   0xc   :  { %86 = shalt.err (!%p83_p4)
}
   0xd   :  { %s87_s26 = scalar_lea.vmem %s17_s13, 128  ;;  %p92_p6 = scmp.lt.s32.totalorder %s17_s13, %s17_s13 }
   0xe   :  { %p88_p5 = scmp.ne.s32.totalorder %s17_s13, %s87_s26  ;;  %p93_p7 = scmp.lt.s32.totalorder %s87_s26, %s87_s26 }
  0x10   :  { %p94_p8 = por %p93_p7, %p92_p6 }
  0x12   :  { %p95_p9 = pnand %p94_p8, %p88_p5 }
  0x14   :  { %98 = shalt.err (!%p95_p9)
}
  0x15   :  { %19 = dma.hbm_to_vmem [thread:$0]  %s212_s0, 128, %s17_s13, [#allocation3]  }
  0x16   :  { %s123_s3 = scalar_lea.hbm %s213_s1, 256  ;;  %p102_p11 = scmp.lt.u32.totalorder %s173_s11, %s213_s1 }
  0x17   :  { %p100_p10 = scmp.ne.s32.totalorder %s173_s11, %s123_s3  ;;  %p103_p12 = scmp.lt.u32.totalorder %s123_s3, %s123_s3 }
  0x18   :  { %p105_p0 = scmp.lt.u32.totalorder %s123_s3, %s173_s11 }
  0x19   :  { %p104_p13 = por %p103_p12, %p102_p11 }
  0x1b   :  { %p106_p1 = por %p105_p0, %p104_p13 }
  0x1d   :  { %p107_p2 = pnand %p106_p1, %p100_p10 }
  0x1f   :  { %110 = shalt.err (!%p107_p2)
}
  0x20   :  { %s111_s6 = scalar_lea.vmem %s31_s15, 128  ;;  %p116_p4 = scmp.lt.s32.totalorder %s31_s15, %s31_s15 }
  0x21   :  { %p112_p3 = scmp.ne.s32.totalorder %s31_s15, %s111_s6  ;;  %p117_p5 = scmp.lt.s32.totalorder %s111_s6, %s111_s6 }
  0x23   :  { %p118_p6 = por %p117_p5, %p116_p4 }
  0x25   :  { %p119_p7 = pnand %p118_p6, %p112_p3 }
  0x27   :  { %122 = shalt.err (!%p119_p7)
}
  0x28   :  { %33 = dma.hbm_to_vmem [thread:$0]  %s173_s11, 128, %s31_s15, [#allocation6]  }
  0x29   :  { %146 = dma.done.wait [#allocation3], 128  }
  0x2a   :  { %147 = vsyncadd [#allocation3], 4294967168 }
  0x2b   :  { %148 = dma.done.wait [#allocation6], 128  }
  0x2c   :  { %149 = vsyncadd [#allocation6], 4294967168  ;;  %v43_v0 = vld [vmem:[#allocation5] sm:$0xff]  ;;  %v42_v4 = vld [vmem:[#allocation2] sm:$0xff]  ;;  %s154_s0 = smov [#allocation7]  }
  0x2d   :  { %v69_v1 = vmul.f32 -1.442695, %v43_v0  ;;  %s58_s1 = sshll.u32 %s154_s0, 4  ;;  %s59_s1 = int_to_ptr.vmem [resolvable:$true] %s58_s1 }
  0x2e   :  { %s124_s7 = scalar_lea.vmem %s59_s1, 128  ;;  %p129_p9 = scmp.lt.s32.totalorder %s59_s1, %s59_s1 }
  0x2f   :  { %73 = vpow2.f32 %v69_v1  ;;  %p125_p8 = scmp.ne.s32.totalorder %s59_s1, %s124_s7  ;;  %p130_p10 = scmp.lt.s32.totalorder %s124_s7, %s124_s7 }
  0x31   :  { %p131_p11 = por %p130_p10, %p129_p9 }
  0x33   :  { %p132_p12 = pnand %p131_p11, %p125_p8 }
  0x39   :  { %v74_v2 = vpop.eup %73 }
  0x3a   :  { %v47_v3 = vadd.f32 1.0, %v74_v2 }
  0x3c   :  { %75 = vrcp.f32 %v47_v3 }
  0x46   :  { %v76_v5 = vpop.eup %75 }
  0x47   :  { %v50_v6 = vmul.f32 %v76_v5, %v42_v4 }
  0x49   :  { %51 = vst [vmem:[#allocation7] sm:$0xff] %v50_v6 }
  0x4a   :  { %135 = shalt.err (!%p132_p12)
}
  0x4b   :  { %s136_s10 = scalar_lea.hbm %s214_s2, 128 }
  0x4c   :  { %p137_p13 = scmp.ne.s32.totalorder %s214_s2, %s136_s10  ;;  %p140_p0 = scmp.lt.u32.totalorder %s136_s10, %s214_s2 }
  0x4e   :  { %p142_p1 = pnand %p140_p0, %p137_p13 }
  0x50   :  { %145 = shalt.err (!%p142_p1)
}
  0x51   :  { %61 = dma.vmem_to_hbm [thread:$0]  %s59_s1, 128, %s214_s2, [#allocation4]  }
  0x52   :  { %150 = dma.done.wait [#allocation4], 128  }
  0x53   :  { %151 = vsyncadd [#allocation4], 4294967168 }
  0x54   :  { %65 = vsyncpa [#allocation3], 1 }
  0x55   :  { %66 = vsyncpa [#allocation6], 1 }
  0x56   :  { %67 = vsyncpa [#allocation4], 1 }

</bundles_post_ra>
